<compile_context>
chip_gen: v5e
topology: v5e:2x2
jax: 0.10.0
libtpu: 0.0.40
codegen_flags: <defaults>
</compile_context>

<pallas_src>
import math

import jax
import jax.numpy as jnp
from jax.experimental import pallas as pl
from jax.experimental.pallas import tpu as pltpu


# ----------------------------- Pallas kernel -----------------------------

def _pos_enc_kernel(x_ref, pe_ref, o_ref):
    # x_ref:  (bt, ct)  flattened (seq*d_model) columns of one batch tile
    # pe_ref: (1,  ct)  positional-encoding columns (batch-invariant, reused across batch steps)
    # o_ref:  (bt, ct)
    o_ref[...] = x_ref[...] + pe_ref[...]
    # TODO(synk): nn.Dropout path omitted — module default p=0.0 (identity); nonzero p would
    #             need pltpu.prng_seed / pltpu.prng_random_bits.


# ----------------------------- Wrappers -----------------------------

def make_pe_table(d_model, max_seq_len, dtype=jnp.float32):
    """Build the sinusoidal table exactly like the PyTorch __init__."""
    position = jnp.arange(0.0, max_seq_len, dtype=jnp.float32)[:, None]          # (L, 1)
    div_term = jnp.exp(jnp.arange(0.0, d_model, 2.0, dtype=jnp.float32)
                       * -(math.log(10000.0) / d_model))                         # (D/2,)
    angles = position * div_term[None, :]                                        # (L, D/2)
    pe = jnp.zeros((max_seq_len, d_model), jnp.float32)
    pe = pe.at[:, 0::2].set(jnp.sin(angles))
    pe = pe.at[:, 1::2].set(jnp.cos(angles))
    return pe.astype(dtype)


def positional_encoding(x, pe, *, vmem_budget_bytes=24 << 20, target_step_bytes=2 << 20):
    """out = x + pe[:S]   (x: (B, S, D), pe: (max_seq_len, D), max_seq_len >= S)."""
    B, S, D = x.shape
    N = S * D
    itemsize = jnp.dtype(x.dtype).itemsize

    # Layout plumbing: flatten (S, D) -> N so the output's last dim is lane-dense
    # (multiple of 128) regardless of d_model. The add is unchanged.
    x2 = x.reshape(B, N)
    pe2 = pe[:S].astype(x.dtype).reshape(1, N)   # cast once in the wrapper; kernel adds in x.dtype

    # Batch tile: full batch when small, otherwise a multiple of 8 (sublane rule).
    bt = B if B <= 8 else 8

    # Column tile: multiple of 128 (lane rule). Big enough to amortize the ~0.35us/step
    # overhead, small enough that double-buffered residency
    #   ~ 2 * (x_tile + out_tile + pe_tile) = 2 * (2*bt + 1) * ct * itemsize
    # stays under the VMEM budget (safe on v7x's 64 MiB physical / 32 MiB scoped default).
    ct = target_step_bytes // max(1, bt * itemsize)
    ct = min(ct, vmem_budget_bytes // (2 * (2 * bt + 1) * itemsize))
    ct = max(128, (ct // 128) * 128)
    if N <= ct:
        ct = N                                   # full flattened axis in a single block

    # Batch axis is fastest-varying: pe's block index (0, c) is unchanged across consecutive
    # batch steps, so its tile is fetched from HBM only once per column block.
    grid = (pl.cdiv(N, ct), pl.cdiv(B, bt))

    out2 = pl.pallas_call(
        _pos_enc_kernel,
        out_shape=jax.ShapeDtypeStruct((B, N), x.dtype),
        grid=grid,
        in_specs=[
            pl.BlockSpec((bt, ct), lambda c, b: (b, c)),   # x tile
            pl.BlockSpec((1, ct), lambda c, b: (0, c)),    # pe tile (batch-invariant)
        ],
        out_specs=pl.BlockSpec((bt, ct), lambda c, b: (b, c)),
        compiler_params=pltpu.CompilerParams(
            dimension_semantics=("parallel", "parallel"),
            vmem_limit_bytes=32 * 1024 * 1024),
    )(x2, pe2)
    return out2.reshape(B, S, D)


# ----------------------------- Main -----------------------------

if __name__ == "__main__":
    key = jax.random.PRNGKey(0)
    k0, k1 = jax.random.split(key)

    # Small shape consistent with the module.
    batch, seq, d_model, max_seq_len = 2, 8, 32, 16
    x = jax.random.normal(k0, (batch, seq, d_model), jnp.float32)
    pe = make_pe_table(d_model, max_seq_len)

    out = jax.block_until_ready(jax.jit(positional_encoding)(x, pe))
    ref = x + pe[None, :seq, :]                     # PyTorch forward with dropout p=0.0
    assert out.shape == (batch, seq, d_model)
    assert bool(jnp.all(jnp.isfinite(out)))
    assert bool(jnp.allclose(out, ref, atol=1e-6, rtol=1e-6))

    # Second shape: exercises batch tiling (bt=8, padded last batch block) and pe reuse
    # across consecutive batch grid steps.
    batch2, seq2, d_model2, max_len2 = 9, 16, 32, 32
    x_b = jax.random.normal(k1, (batch2, seq2, d_model2), jnp.float32)
    pe_b = make_pe_table(d_model2, max_len2)
    out_b = jax.block_until_ready(jax.jit(positional_encoding)(x_b, pe_b))
    ref_b = x_b + pe_b[None, :seq2, :]
    assert bool(jnp.allclose(out_b, ref_b, atol=1e-6, rtol=1e-6))

    print("KERNEL_OK")
</pallas_src>

<mosaic_0001>
module attributes {stable_mosaic.version = 11 : i64} {
  func.func @_pos_enc_kernel(%arg0: i32, %arg1: i32, %arg2: memref<2x256xf32, #tpu.memory_space<vmem>>, %arg3: memref<1x256xf32, #tpu.memory_space<vmem>>, %arg4: memref<2x256xf32, #tpu.memory_space<vmem>>) attributes {dimension_semantics = [#tpu.dimension_semantics<parallel>, #tpu.dimension_semantics<parallel>], iteration_bounds = array<i64: 1, 1>, scalar_prefetch = 0 : i64, scratch_operands = 0 : i64, tpu.core_type = #tpu.core_type<tc>, window_params = [{transform_indices = @transform_0, window_bounds = array<i64: 2, 256>}, {transform_indices = @transform_1, window_bounds = array<i64: 1, 256>}, {transform_indices = @transform_2, window_bounds = array<i64: 2, 256>}]} {
    %c0 = arith.constant 0 : index
    %c0_0 = arith.constant 0 : index
    %0 = vector.load %arg2[%c0, %c0_0] : memref<2x256xf32, #tpu.memory_space<vmem>>, vector<2x256xf32>
    %c0_1 = arith.constant 0 : index
    %c0_2 = arith.constant 0 : index
    %1 = vector.load %arg3[%c0_1, %c0_2] : memref<1x256xf32, #tpu.memory_space<vmem>>, vector<1x256xf32>
    %2 = vector.broadcast %1 : vector<1x256xf32> to vector<2x256xf32>
    %3 = arith.addf %0, %2 : vector<2x256xf32>
    %c0_3 = arith.constant 0 : index
    %c0_4 = arith.constant 0 : index
    %4 = vector.load %arg4[%c0_3, %c0_4] : memref<2x256xf32, #tpu.memory_space<vmem>>, vector<2x256xf32>
    tpu.vector_store %arg4[%c0_3, %c0_4], %3 {strides = array<i32>} : memref<2x256xf32, #tpu.memory_space<vmem>>, vector<2x256xf32>,
    return
  }
  func.func @transform_0(%arg0: i32, %arg1: i32) -> (i32, i32) {
    %c0_i32 = arith.constant 0 : i32
    return %arg1, %arg0 : i32, i32
  }
  func.func @transform_1(%arg0: i32, %arg1: i32) -> (i32, i32) {
    %c0_i32 = arith.constant 0 : i32
    %c0_i32_0 = arith.constant 0 : i32
    return %c0_i32, %arg0 : i32, i32
  }
  func.func @transform_2(%arg0: i32, %arg1: i32) -> (i32, i32) {
    %c0_i32 = arith.constant 0 : i32
    return %arg1, %arg0 : i32, i32
  }
}

</mosaic_0001>

<bundles_post_ra>
// kernel: positional_encoding.1
= control target key start
LH: loop header
LB: loop body
LE: loop exit
PB: predicated region body
PF: predicated region fallthrough
CT: control target
= control target key end

     0   :  { %vm17_vm0 = vcmask 1041408   ;;  %s50_s1 = inlined_call_operand.vmem [shape: f32[1,256], index: 1, kind: input, shape index: {}]   ;;  %s51_s0 = inlined_call_operand.vmem [shape: f32[2,256], index: 0, kind: input, shape index: {}]   ;;  %s52_s2 = inlined_call_operand.vmem [shape: f32[2,256], index: 2, kind: output, shape index: {}]  }
   0x1   :  { %v12_v0 = vld [vmem:[%s50_s1] sm:$0x3] }
   0x2   :  { %v14_v1 = vperm.slane %v12_v0, 0  ;;  %v15_v2 = vperm.slane %v12_v0, 1  ;;  %v11_v3 = vld [vmem:[%s51_s0] sm:$0xf] }
   0x4   :  { %v16_v4 = vrot.slane %v15_v2, 6 }
   0x6   :  { %v18_v5 = vsel %vm17_vm0, %v14_v1, %v16_v4 }
   0x7   :  { %v20_v6 = vadd.f32 %v18_v5, %v11_v3 }
   0x9   :  { %21 = vst [vmem:[%s52_s2] sm:$0xf] %v20_v6 }

</bundles_post_ra>
